<compile_context>
chip_gen: v7x
topology: tpu7x:2x2x1
jax: 0.10.0
libtpu: 0.0.40
codegen_flags: <defaults>
</compile_context>

<pallas_src>
import functools

import jax
import jax.numpy as jnp
from jax.experimental import pallas as pl
from jax.experimental.pallas import tpu as pltpu


def _round_up(x: int, m: int) -> int:
    return ((x + m - 1) // m) * m


def _cdiv(a: int, b: int) -> int:
    return (a + b - 1) // b


def _vmem_capacity_bytes() -> int:
    """Physical VMEM per TensorCore (v7x: 64 MiB; v5e/v6e: 128 MiB)."""
    try:
        return int(pltpu.get_tpu_info().vmem_capacity_bytes)
    except Exception:
        pass
    try:
        kind = jax.devices()[0].device_kind.lower()
    except Exception:
        kind = ""
    if ("v7" in kind) or ("7x" in kind):
        return 64 * 1024 * 1024
    return 128 * 1024 * 1024


def _pick_chunk(m_p: int, max_chunk: int = 512) -> int:
    """Largest multiple of 128 <= max_chunk that divides m_p (m_p is a multiple of 128)."""
    c = max(128, min(m_p, max(128, max_chunk)) // 128 * 128)
    while m_p % c:
        c -= 128
    return c


def _pad_cast(a, target_shape, dtype):
    """Zero-pad to target_shape and cast, skipping both when already aligned."""
    pads = tuple((0, t - s) for s, t in zip(a.shape, target_shape))
    if any(p for _, p in pads):
        a = jnp.pad(a, pads)
    if a.dtype != dtype:
        a = a.astype(dtype)
    return a


# ----------------------------------------------------------------------------
# Kernels
# ----------------------------------------------------------------------------

def _resident_kernel(x_ref, w1_ref, b1_ref, w2_ref, b2_ref, o_ref, acc_ref,
                     *, num_chunks, chunk):
    """Weights fully resident in VMEM; hidden dim chunked internally (static slices)."""
    acc_ref[...] = jnp.zeros_like(acc_ref)
    for c in range(num_chunks):          # static unroll; slices of resident refs are free
        lo, hi = c * chunk, (c + 1) * chunk
        h = jnp.dot(x_ref[...], w1_ref[:, lo:hi],
                    preferred_element_type=jnp.float32)
        h = jnp.maximum(h + b1_ref[:, lo:hi], 0.0)          # Dropout(eval) == identity
        acc_ref[...] += jnp.dot(h.astype(w2_ref.dtype), w2_ref[lo:hi, :],
                                preferred_element_type=jnp.float32)
    o_ref[...] = (acc_ref[...] + b2_ref[...]).astype(o_ref.dtype)


def _streaming_kernel(x_ref, w1_ref, b1_ref, w2_ref, b2_ref, o_ref, acc_ref):
    """Weights streamed in hidden-dim chunks via grid axis 1 (reduction axis, last)."""
    k = pl.program_id(1)

    @pl.when(k == 0)
    def _():
        acc_ref[...] = jnp.zeros_like(acc_ref)

    h = jnp.dot(x_ref[...], w1_ref[...], preferred_element_type=jnp.float32)
    h = jnp.maximum(h + b1_ref[...], 0.0)                     # Dropout(eval) == identity
    acc_ref[...] += jnp.dot(h.astype(w2_ref.dtype), w2_ref[...],
                            preferred_element_type=jnp.float32)

    @pl.when(k == pl.num_programs(1) - 1)
    def _():
        o_ref[...] = (acc_ref[...] + b2_ref[...]).astype(o_ref.dtype)


# ----------------------------------------------------------------------------
# Wrapper
# ----------------------------------------------------------------------------

def im2text_forward(x, w1, b1, w2, b2, *, compute_dtype=jnp.bfloat16, out_dtype=None,
                    max_hidden_chunk=512, force_streaming=False):
    N, E = x.shape
    M = w1.shape[1]
    O = w2.shape[1]
    assert w1.shape == (E, M) and w2.shape == (M, O)
    assert b1.shape == (1, M) and b2.shape == (1, O)

    out_dtype = x.dtype if out_dtype is None else out_dtype
    out_isize = jnp.dtype(out_dtype).itemsize
    cdt_isize = jnp.dtype(compute_dtype).itemsize

    # Lane-dense / MXU-friendly padding of feature dims.
    E_p, M_p, O_p = (_round_up(d, 128) for d in (E, M, O))

    vmem_cap = _vmem_capacity_bytes()
    budget = int(vmem_cap * 0.75)      # headroom for Mosaic internal scratch / spills

    # Hidden-dim chunk width: bounds the live f32 intermediate and is the W1/W2
    # streaming block width in the streaming path.
    chunk = _pick_chunk(M_p, max_hidden_chunk)

    # Batch tile: 16-aligned (bf16 packed tile is (16,128)), target 256 (v7x) / 512
    # (v5e/v6e), and make sure there are >= 2 batch grid steps when possible so both
    # v7x TensorCores get work.
    tm_target = 512 if vmem_cap >= (128 << 20) else 256
    if N >= 2 * tm_target:
        tm = tm_target
    else:
        tm = min(tm_target, max(_round_up(_cdiv(N, 2), 16), 16))

    # Resident vs streaming weights.
    weight_bytes = (E_p * M_p + M_p * O_p) * cdt_isize
    resident = (not force_streaming) and (weight_bytes <= int(0.6 * budget))

    def vmem_need(tm_):
        common = (2 * tm_ * E_p * cdt_isize        # double-buffered x tile
                  + 2 * tm_ * O_p * out_isize      # double-buffered out tile
                  + tm_ * O_p * 4                  # f32 accumulator scratch
                  + tm_ * chunk * 4)               # live f32 hidden chunk
        if resident:
            return common + weight_bytes + (M_p + O_p) * 4            # Buffered(1)
        return (common + 2 * (E_p * chunk + chunk * O_p) * cdt_isize  # streamed chunks
                + 2 * (chunk + O_p) * 4)

    while vmem_need(tm) > budget and tm > 16:
        tm = max(16, _round_up(tm // 2, 16))

    N_p = _round_up(max(N, 1), tm)

    # Pad / cast (skipped when already aligned -> no extra HBM round trip).
    x_p = _pad_cast(x, (N_p, E_p), compute_dtype)
    w1_p = _pad_cast(w1, (E_p, M_p), compute_dtype)
    w2_p = _pad_cast(w2, (M_p, O_p), compute_dtype)
    b1_p = _pad_cast(b1, (1, M_p), jnp.float32)
    b2_p = _pad_cast(b2, (1, O_p), jnp.float32)

    vmem_limit = max(int(vmem_need(tm) * 1.25) + (2 << 20), 16 << 20)
    vmem_limit = min(_round_up(vmem_limit, 1 << 20), budget)

    cost = pl.CostEstimate(
        flops=2 * N_p * (E_p * M_p + M_p * O_p),
        transcendentals=0,
        bytes_accessed=int(x_p.size * cdt_isize + w1_p.size * cdt_isize
                           + w2_p.size * cdt_isize + (M_p + O_p) * 4
                           + N_p * O_p * out_isize),
    )

    if resident:
        kernel = functools.partial(_resident_kernel,
                                   num_chunks=M_p // chunk, chunk=chunk)
        keep = pl.Buffered(1)      # constant index map -> no pointless double buffering
        grid_spec = pltpu.PrefetchScalarGridSpec(
            num_scalar_prefetch=0,
            grid=(N_p // tm,),
            in_specs=[
                pl.BlockSpec((tm, E_p), lambda i: (i, 0)),                          # x tile
                pl.BlockSpec((E_p, M_p), lambda i: (0, 0), pipeline_mode=keep),     # W1
                pl.BlockSpec((1, M_p), lambda i: (0, 0), pipeline_mode=keep),       # b1
                pl.BlockSpec((M_p, O_p), lambda i: (0, 0), pipeline_mode=keep),     # W2
                pl.BlockSpec((1, O_p), lambda i: (0, 0), pipeline_mode=keep),       # b2
            ],
            out_specs=pl.BlockSpec((tm, O_p), lambda i: (i, 0)),                    # lane-dense
            scratch_shapes=[pltpu.VMEM((tm, O_p), jnp.float32)],
        )
        dims = ("parallel",)
    else:
        kernel = _streaming_kernel
        grid_spec = pltpu.PrefetchScalarGridSpec(
            num_scalar_prefetch=0,
            grid=(N_p // tm, M_p // chunk),                 # reduction (hidden) axis last
            in_specs=[
                pl.BlockSpec((tm, E_p), lambda i, k: (i, 0)),       # x tile (constant in k)
                pl.BlockSpec((E_p, chunk), lambda i, k: (0, k)),    # W1 hidden chunk
                pl.BlockSpec((1, chunk), lambda i, k: (0, k)),      # b1 hidden chunk
                pl.BlockSpec((chunk, O_p), lambda i, k: (k, 0)),    # W2 hidden chunk
                pl.BlockSpec((1, O_p), lambda i, k: (0, 0)),        # b2
            ],
            out_specs=pl.BlockSpec((tm, O_p), lambda i, k: (i, 0)),
            scratch_shapes=[pltpu.VMEM((tm, O_p), jnp.float32)],
        )
        dims = ("parallel", "arbitrary")

    out_p = pl.pallas_call(
        kernel,
        out_shape=jax.ShapeDtypeStruct((N_p, O_p), out_dtype),
        grid_spec=grid_spec,
        compiler_params=pltpu.CompilerParams(
            dimension_semantics=dims,
            vmem_limit_bytes=int(vmem_limit),
        ),
        cost_estimate=cost,
    )(x_p, w1_p, b1_p, w2_p, b2_p)

    return out_p[:N, :O]


def init_params(key, embed_dim, middle_dim, output_dim, dtype=jnp.float32):
    # Deterministic init mimicking nn.Linear's uniform(-1/sqrt(fan_in), 1/sqrt(fan_in)).
    k1, k2, k3, k4 = jax.random.split(key, 4)
    lim1 = 1.0 / (embed_dim ** 0.5)
    lim2 = 1.0 / (middle_dim ** 0.5)
    w1 = jax.random.uniform(k1, (embed_dim, middle_dim), dtype, -lim1, lim1)
    b1 = jax.random.uniform(k2, (1, middle_dim), dtype, -lim1, lim1)
    w2 = jax.random.uniform(k3, (middle_dim, output_dim), dtype, -lim2, lim2)
    b2 = jax.random.uniform(k4, (1, output_dim), dtype, -lim2, lim2)
    return w1, b1, w2, b2


if __name__ == "__main__":
    # Small shapes consistent with the module (embed_dim -> middle_dim -> output_dim),
    # deliberately NOT multiples of 128 / tile so the padding + ragged-batch path runs.
    batch, embed_dim, middle_dim, output_dim = 20, 160, 192, 96

    key = jax.random.PRNGKey(0)
    kx, kp = jax.random.split(key)
    x = jax.random.normal(kx, (batch, embed_dim), dtype=jnp.float32)
    w1, b1, w2, b2 = init_params(kp, embed_dim, middle_dim, output_dim)

    # Pure-JAX f32 reference (dropout = identity in eval mode). Kernel uses bf16 MXU
    # operands with f32 accumulation -> loosened tolerance.
    ref = jnp.maximum(x @ w1 + b1, 0.0) @ w2 + b2

    # Path 1: resident-weights kernel (the common case for this module's sizes).
    out = jax.block_until_ready(im2text_forward(x, w1, b1, w2, b2))
    assert out.shape == (batch, output_dim)
    assert jnp.allclose(out, ref, atol=5e-2, rtol=5e-2), float(jnp.max(jnp.abs(out - ref)))

    # Path 2: streaming-weights kernel (accumulator over hidden-dim chunks), exercised
    # here with a small chunk so the reduction grid axis has >1 step.
    out2 = jax.block_until_ready(
        im2text_forward(x, w1, b1, w2, b2, force_streaming=True, max_hidden_chunk=128))
    assert out2.shape == (batch, output_dim)
    assert jnp.allclose(out2, ref, atol=5e-2, rtol=5e-2), float(jnp.max(jnp.abs(out2 - ref)))

    print("KERNEL_OK")
</pallas_src>

<mosaic_0001>
module attributes {stable_mosaic.version = 11 : i64} {
  func.func @_resident_kernel(%arg0: i32, %arg1: memref<16x256xbf16, #tpu.memory_space<vmem>>, %arg2: memref<256x256xbf16, #tpu.memory_space<vmem>>, %arg3: memref<1x256xf32, #tpu.memory_space<vmem>>, %arg4: memref<256x128xbf16, #tpu.memory_space<vmem>>, %arg5: memref<1x128xf32, #tpu.memory_space<vmem>>, %arg6: memref<16x128xf32, #tpu.memory_space<vmem>>, %arg7: memref<16x128xf32, #tpu.memory_space<vmem>>) attributes {dimension_semantics = [#tpu.dimension_semantics<parallel>], iteration_bounds = array<i64: 2>, scalar_prefetch = 0 : i64, scratch_operands = 1 : i64, tpu.core_type = #tpu.core_type<tc>, window_params = [{transform_indices = @transform_0, window_bounds = array<i64: 16, 256>}, {pipeline_mode = #tpu.pipeline_mode<synchronous>, transform_indices = @transform_1, window_bounds = array<i64: 256, 256>}, {pipeline_mode = #tpu.pipeline_mode<synchronous>, transform_indices = @transform_2, window_bounds = array<i64: 1, 256>}, {pipeline_mode = #tpu.pipeline_mode<synchronous>, transform_indices = @transform_3, window_bounds = array<i64: 256, 128>}, {pipeline_mode = #tpu.pipeline_mode<synchronous>, transform_indices = @transform_4, window_bounds = array<i64: 1, 128>}, {transform_indices = @transform_5, window_bounds = array<i64: 16, 128>}]} {
    %cst = arith.constant 0.000000e+00 : f32
    %0 = vector.broadcast %cst : f32 to vector<16x128xf32>
    %c0 = arith.constant 0 : index
    %c0_0 = arith.constant 0 : index
    %1 = vector.load %arg7[%c0, %c0_0] : memref<16x128xf32, #tpu.memory_space<vmem>>, vector<16x128xf32>
    tpu.vector_store %arg7[%c0, %c0_0], %0 {strides = array<i32>} : memref<16x128xf32, #tpu.memory_space<vmem>>, vector<16x128xf32>,
    %c0_1 = arith.constant 0 : index
    %c0_2 = arith.constant 0 : index
    %2 = vector.load %arg1[%c0_1, %c0_2] : memref<16x256xbf16, #tpu.memory_space<vmem>>, vector<16x256xbf16>
    %c0_3 = arith.constant 0 : index
    %c0_4 = arith.constant 0 : index
    %3 = vector.load %arg2[%c0_3, %c0_4] : memref<256x256xbf16, #tpu.memory_space<vmem>>, vector<256x256xbf16>
    %cst_5 = arith.constant dense<0.000000e+00> : vector<16x256xf32>
    %4 = tpu.matmul %2, %3, %cst_5 {dimension_numbers = #tpu.dot_dimension_numbers<[1], [0], [0], [1], [0, 0, 1, 1], [], []>} : vector<16x256xbf16>, vector<256x256xbf16>, vector<16x256xf32> -> vector<16x256xf32>
    %c0_6 = arith.constant 0 : index
    %c0_7 = arith.constant 0 : index
    %5 = vector.load %arg3[%c0_6, %c0_7] : memref<1x256xf32, #tpu.memory_space<vmem>>, vector<1x256xf32>
    %6 = vector.broadcast %5 : vector<1x256xf32> to vector<16x256xf32>
    %7 = arith.addf %4, %6 : vector<16x256xf32>
    %cst_8 = arith.constant 0.000000e+00 : f32
    %8 = vector.broadcast %cst_8 : f32 to vector<16x256xf32>
    %9 = arith.maximumf %7, %8 : vector<16x256xf32>
    %c0_9 = arith.constant 0 : index
    %c0_10 = arith.constant 0 : index
    %10 = vector.load %arg7[%c0_9, %c0_10] : memref<16x128xf32, #tpu.memory_space<vmem>>, vector<16x128xf32>
    %11 = arith.truncf %9 : vector<16x256xf32> to vector<16x256xbf16>
    %c0_11 = arith.constant 0 : index
    %c0_12 = arith.constant 0 : index
    %12 = vector.load %arg4[%c0_11, %c0_12] : memref<256x128xbf16, #tpu.memory_space<vmem>>, vector<256x128xbf16>
    %cst_13 = arith.constant dense<0.000000e+00> : vector<16x128xf32>
    %13 = tpu.matmul %11, %12, %cst_13 {dimension_numbers = #tpu.dot_dimension_numbers<[1], [0], [0], [1], [0, 0, 1, 1], [], []>} : vector<16x256xbf16>, vector<256x128xbf16>, vector<16x128xf32> -> vector<16x128xf32>
    %14 = arith.addf %10, %13 : vector<16x128xf32>
    %c0_14 = arith.constant 0 : index
    %c0_15 = arith.constant 0 : index
    %15 = vector.load %arg7[%c0_14, %c0_15] : memref<16x128xf32, #tpu.memory_space<vmem>>, vector<16x128xf32>
    tpu.vector_store %arg7[%c0_14, %c0_15], %14 {strides = array<i32>} : memref<16x128xf32, #tpu.memory_space<vmem>>, vector<16x128xf32>,
    %c0_16 = arith.constant 0 : index
    %c0_17 = arith.constant 0 : index
    %16 = vector.load %arg7[%c0_16, %c0_17] : memref<16x128xf32, #tpu.memory_space<vmem>>, vector<16x128xf32>
    %c0_18 = arith.constant 0 : index
    %c0_19 = arith.constant 0 : index
    %17 = vector.load %arg5[%c0_18, %c0_19] : memref<1x128xf32, #tpu.memory_space<vmem>>, vector<1x128xf32>
    %18 = vector.broadcast %17 : vector<1x128xf32> to vector<16x128xf32>
    %19 = arith.addf %16, %18 : vector<16x128xf32>
    %c0_20 = arith.constant 0 : index
    %c0_21 = arith.constant 0 : index
    %20 = vector.load %arg6[%c0_20, %c0_21] : memref<16x128xf32, #tpu.memory_space<vmem>>, vector<16x128xf32>
    tpu.vector_store %arg6[%c0_20, %c0_21], %19 {strides = array<i32>} : memref<16x128xf32, #tpu.memory_space<vmem>>, vector<16x128xf32>,
    return
  }
  func.func @transform_0(%arg0: i32) -> (i32, i32) {
    %c0_i32 = arith.constant 0 : i32
    %c0_i32_0 = arith.constant 0 : i32
    return %arg0, %c0_i32 : i32, i32
  }
  func.func @transform_1(%arg0: i32) -> (i32, i32) {
    %c0_i32 = arith.constant 0 : i32
    %c0_i32_0 = arith.constant 0 : i32
    %c0_i32_1 = arith.constant 0 : i32
    return %c0_i32, %c0_i32_0 : i32, i32
  }
  func.func @transform_2(%arg0: i32) -> (i32, i32) {
    %c0_i32 = arith.constant 0 : i32
    %c0_i32_0 = arith.constant 0 : i32
    %c0_i32_1 = arith.constant 0 : i32
    return %c0_i32, %c0_i32_0 : i32, i32
  }
  func.func @transform_3(%arg0: i32) -> (i32, i32) {
    %c0_i32 = arith.constant 0 : i32
    %c0_i32_0 = arith.constant 0 : i32
    %c0_i32_1 = arith.constant 0 : i32
    return %c0_i32, %c0_i32_0 : i32, i32
  }
  func.func @transform_4(%arg0: i32) -> (i32, i32) {
    %c0_i32 = arith.constant 0 : i32
    %c0_i32_0 = arith.constant 0 : i32
    %c0_i32_1 = arith.constant 0 : i32
    return %c0_i32, %c0_i32_0 : i32, i32
  }
  func.func @transform_5(%arg0: i32) -> (i32, i32) {
    %c0_i32 = arith.constant 0 : i32
    %c0_i32_0 = arith.constant 0 : i32
    return %arg0, %c0_i32 : i32, i32
  }
}

</mosaic_0001>

<bundles_post_ra>
// kernel: tpu_custom_call.1
= control target key start
LH: loop header
LB: loop body
LE: loop exit
PB: predicated region body
PF: predicated region fallthrough
CT: control target
= control target key end

     0   :  { %10 = vsyncpa [#allocation4], 0  ;;  %s1524_s0 = inlined_call_operand.hbm [shape: bf16[32,256], index: 0, kind: input, shape index: {}]   ;;  %s1525_s1 = inlined_call_operand.hbm [shape: bf16[256,256], index: 1, kind: input, shape index: {}]   ;;  %s1526_s2 = inlined_call_operand.vmem [shape: f32[1,256], index: 2, kind: input, shape index: {}]   ;;  %s1527_s3 = inlined_call_operand.hbm [shape: bf16[256,128], index: 3, kind: input, shape index: {}]   ;;  %s1528_s4 = inlined_call_operand.vmem [shape: f32[1,128], index: 4, kind: input, shape index: {}]   ;;  %s1529_s5 = inlined_call_operand.hbm [shape: f32[32,128], index: 5, kind: output, shape index: {}]  }
   0x1   :  { %12 = vsyncpa [#allocation4 + $0x1], 0 }
   0x2   :  { %13 = vsyncpa [#allocation7], 0 }
   0x3   :  { %14 = vsyncpa [#allocation5], 0 }
   0x4   :  { %16 = vsyncpa [#allocation5 + $0x1], 0  ;;  %s1270_s18 = smov 0   ;;  %s1272_s19 = smov 0  }
   0x5   :  { %s1274_s20 = smov 0   ;;  %s1276_s21 = smov 0  }
   0x6 LB: > { %s1291_s22 = sadd.s32 4294967295, %s1228_s21   ;;  %s837_s23 = sadd.s32 4294967294, %s1228_s21   ;;  %s1228_s21 = sphi %s1276_s21, %s1549_s21   ;;  %s1224_s20 = sphi %s1274_s20, %s1548_s20   ;;  %s1220_s19 = sphi %s1272_s19, %s1547_s19   ;;  %s1216_s18 = sphi %s1270_s18, %s1546_s18  }
   0x7   : > { %p42_p0 = scmp.ne.s32.totalorder %s1220_s19, %s1216_s18  ;;  %p1530_p1 = scmp.eq.s32.totalorder %s1291_s22, 0 }
   0x8   : > { %p156_p3 = scmp.eq.s32.totalorder %s837_s23, 1  ;;  %p838_p5 = scmp.ge.s32.totalorder %s1228_s21, 1 }
   0x9   : > { %p1300_p4 = por %p1530_p1, %p42_p0  ;;  %p163_p7 = scmp.lt.s32.totalorder %s1228_s21, 3 }
   0xa   : > { %p1305_p6 = por %p156_p3, %p42_p0  ;;  %s1230_s27 = smov [#allocation6]  }
   0xb   : > { %s1533_s24 = scalar_select %p1300_p4, 1, 0 }
   0xc   : > { %s1534_s25 = scalar_select %p1305_p6, 1, 0 }
   0xd   : > { %p1310_p8 = pnand %p838_p5, %p163_p7  ;;  %s175_s28 = sshll.u32 %s1230_s27, 4  ;;  %s1314_s28 = int_to_ptr.vmem [resolvable:$true] %s175_s28 }
   0xe   : > { %s1231_s30 = smov [#allocation8]   ;;  %s1072_s9 = scalar_lea.hbm %s1525_s1, 4096 }
   0xf   : > { %p944_p9 = pneg %p1310_p8  ;;  %s191_s6 = sshll.u32 %s1231_s30, 4  ;;  %s1325_s6 = int_to_ptr.vmem [resolvable:$true] %s191_s6 }
  0x10   : > { %p1073_p12 = scmp.ne.s32.totalorder %s1525_s1, %s1072_s9  ;;  %p1079_p5 = scmp.lt.u32.totalorder %s1072_s9, %s1525_s1 }
  0x11   : > { %p1321_p11 = pnand %p944_p9, %p1530_p1 }
  0x13   : > { %p1074_p13 = pneg %p1321_p11 }
  0x15   : > { %p1075_p0 = pnand %p1074_p13, %p1073_p12 }
  0x17   : > { %p1076_p3 = pneg %p1075_p0 }
  0x19   : > { %p1081_p7 = pnand %p1079_p5, %p1076_p3 }
  0x1b   : > { %1084 = shalt.err (!%p1081_p7)
}
  0x1c   : > { %s1085_s14 = scalar_lea.vmem %s1314_s28, 4096  ;;  %p1093_p2 = scmp.lt.s32.totalorder %s1314_s28, %s1314_s28 }
  0x1d   : > { %p1086_p9 = scmp.ne.s32.totalorder %s1314_s28, %s1085_s14  ;;  %p1094_p12 = scmp.lt.s32.totalorder %s1085_s14, %s1085_s14 }
  0x1f   : > { %p1088_p10 = pnand %p1086_p9, %p1074_p13  ;;  %p1095_p0 = por %p1094_p12, %p1093_p2 }
  0x21   : > { %p1089_p1 = pneg %p1088_p10 }
  0x23   : > { %p1096_p6 = pnand %p1095_p0, %p1089_p1 }
  0x25   : > { %1099 = shalt.err (!%p1096_p6)
}
  0x26   : > { %s1232_s15 = smov 128   ;;  %s1233_s16 = smov 8  }
  0x27   : > { %947 = dma.hbm_to_vmem [thread:$0]  (!%p1321_p11), %s1525_s1, 4096, %s1314_s28, [#allocation7], %s1232_s15, %s1232_s15, %s1233_s16  }
  0x28   : > { %s1100_s7 = scalar_lea.hbm %s1527_s3, 2048 }
  0x29   : > { %p1101_p1 = scmp.ne.s32.totalorder %s1527_s3, %s1100_s7  ;;  %p1107_p10 = scmp.lt.u32.totalorder %s1100_s7, %s1527_s3 }
  0x2b   : > { %p1103_p2 = pnand %p1101_p1, %p1074_p13 }
  0x2d   : > { %p1104_p6 = pneg %p1103_p2 }
  0x2f   : > { %p1109_p3 = pnand %p1107_p10, %p1104_p6 }
  0x31   : > { %1112 = shalt.err (!%p1109_p3)
}
  0x32   : > { %s1113_s28 = scalar_lea.vmem %s1325_s6, 2048  ;;  %p1121_p12 = scmp.lt.s32.totalorder %s1325_s6, %s1325_s6 }
  0x33   : > { %p1114_p5 = scmp.ne.s32.totalorder %s1325_s6, %s1113_s28  ;;  %p1122_p0 = scmp.lt.s32.totalorder %s1113_s28, %s1113_s28 }
  0x35   : > { %p1116_p7 = pnand %p1114_p5, %p1074_p13  ;;  %p1123_p1 = por %p1122_p0, %p1121_p12 }
  0x37   : > { %p1117_p9 = pneg %p1116_p7 }
  0x39   : > { %p1124_p2 = pnand %p1123_p1, %p1117_p9 }
  0x3b   : > { %1127 = shalt.err (!%p1124_p2)
}
  0x3c   : > { %s1234_s12 = smov 64   ;;  %s1235_s13 = smov 4  }
  0x3d   : > { %950 = dma.hbm_to_vmem [thread:$0]  (!%p1321_p11), %s1527_s3, 2048, %s1325_s6, [#allocation7], %s1234_s12, %s1234_s12, %s1235_s13  }
  0x3e   : > { %s1383_s23 = sadd.s32 1, %s1228_s21   ;;  %s29_s30 = sadd.s32 1, %s1224_s20 }
  0x3f   : > { %s26_s27 = ssub.s32 %s1228_s21, %s1383_s23  ;;  %p36_p6 = scmp.ne.s32.totalorder %s1224_s20, %s1220_s19 }
  0x40   : > { %p27_p13 = scmp.eq.s32.totalorder %s26_s27, 0  ;;  %p37_p10 = scmp.eq.s32.totalorder %s1228_s21, 0 }
  0x41   : > { %p1537_p5 = scmp.eq.s32.totalorder %s1291_s22, 1  ;;  %p961_p9 = scmp.lt.s32.totalorder %s1228_s21, 2 }
  0x42   : > { %s1392_s7 = scalar_select %p27_p13, %s1224_s20, %s29_s30  }
  0x43   : > { %p38_p3 = por %p37_p10, %p36_p6  ;;  %p1396_p7 = por %p1537_p5, %p36_p6 }
  0x44   : > { %s208_s29 = sand.u32 1, %s1224_s20   ;;  %s908_s6 = sshll.u32 %s1228_s21, 8 }
  0x45   : > { %s1538_s8 = scalar_select %p1396_p7, 1, 0 }
  0x46   : > { %s842_s9 = sshll.u32 %s208_s29, 4  ;;  %s1406_s28 = scalar_lea.hbm %s1524_s0, %s908_s6 }
  0x47   : > { %s212_s12 = scalar_lea.vmem [#allocation3], %s842_s9  ;;  %p1410_p11 = pnand %p961_p9, %p38_p3 }
  0x48   : > { %s220_s13 = sshll.u32 %s212_s12, 4  ;;  %s1414_s17 = scalar_lea.sflag [#allocation4], %s208_s29  ;;  %s1408_s13 = int_to_ptr.vmem [resolvable:$true] %s220_s13 }
  0x49   : > { %s1128_s27 = scalar_lea.hbm %s1406_s28, 256  ;;  %p1130_p0 = pneg %p1410_p11 }
  0x4a   : > { %p1129_p12 = scmp.ne.s32.totalorder %s1406_s28, %s1128_s27  ;;  %s1133_s6 = scalar_lea.hbm %s1524_s0, 512 }
  0x4b   : > { %p1134_p13 = scmp.lt.u32.totalorder %s1406_s28, %s1524_s0  ;;  %p1135_p6 = scmp.lt.u32.totalorder %s1133_s6, %s1128_s27 }
  0x4c   : > { %p1131_p1 = pnand %p1130_p0, %p1129_p12  ;;  %p1137_p3 = scmp.lt.u32.totalorder %s1128_s27, %s1406_s28 }
  0x4d   : > { %p1136_p10 = por %p1135_p6, %p1134_p13 }
  0x4e   : > { %p1132_p2 = pneg %p1131_p1 }
  0x4f   : > { %p1138_p5 = por %p1137_p3, %p1136_p10 }
  0x51   : > { %p1139_p9 = pnand %p1138_p5, %p1132_p2 }
  0x53   : > { %1142 = shalt.err (!%p1139_p9)
}
  0x54   : > { %s1143_s29 = scalar_lea.vmem %s1408_s13, 256  ;;  %s1236_s12 = smov [#allocation3]  }
  0x55   : > { %p1144_p12 = scmp.ne.s32.totalorder %s1408_s13, %s1143_s29  ;;  %s1148_s30 = sshll.u32 %s1236_s12, 4  ;;  %s1149_s30 = int_to_ptr.vmem [resolvable:$false] %s1148_s30 }
  0x56   : > { %s1150_s9 = scalar_lea.vmem %s1149_s30, 512  ;;  %p1151_p4 = scmp.lt.s32.totalorder %s1408_s13, %s1149_s30 }
  0x57   : > { %p1146_p1 = pnand %p1144_p12, %p1130_p0  ;;  %p1152_p13 = scmp.lt.s32.totalorder %s1150_s9, %s1143_s29 }
  0x59   : > { %p1147_p7 = pneg %p1146_p1  ;;  %p1153_p6 = por %p1152_p13, %p1151_p4 }
  0x5b   : > { %p1154_p10 = pnand %p1153_p6, %p1147_p7 }
  0x5d   : > { %1157 = shalt.err (!%p1154_p10)
}
  0x5e   : > { %954 = dma.hbm_to_vmem [thread:$0]  (!%p1410_p11), %s1406_s28, 256, %s1408_s13, %s1414_s17, %s1232_s15, %s1232_s15, %s1233_s16  }
  0x5f   : > { %232 = sbr.rel (%p1310_p8) target bundleno = 627 (0x273), region = 40  ;;  %s1448_s27 = sand.u32 (!%p1310_p8), 1, %s1220_s19  }
  0x60   : > { %s847_s6 = sshll.u32 (!%p1310_p8), %s1448_s27, 4  ;;  %s235_s10 = scalar_lea.sflag (!%p1310_p8), [#allocation4], %s1448_s27 }
  0x61   : > { %s1454_s14 = scalar_lea.vmem (!%p1310_p8), [#allocation3], %s847_s6  ;;  %p1540_p4 = scmp.ne.s32.totalorder (!%p1310_p8), %s1533_s24, 0 }
  0x66   : > { %1203 = dma.done.wait (%p1540_p4), %s235_s10, 256  }
  0x67   : > { %1205 = vsyncadd (%p1540_p4), %s235_s10, 4294967040  ;;  %p1541_p7 = scmp.eq.s32.totalorder %s1291_s22, 0 }
  0x69   : > { %1207 = dma.done.wait (%p1541_p7), [#allocation7], 6144   ;;  %p1542_p8 = pmov %p1541_p7 }
  0x6a   : > { %v1005_v0 = vld [vmem:[#allocation6 + $0x4] ss:$8 sps:$4 sm:$0xff]   ;;  %v1007_v1 = vld [vmem:[#allocation6] ss:$8 sps:$4 sm:$0xff]   ;;  %v1008_v2 = vld [vmem:[#allocation6 + $0x14] ss:$8 sps:$4 sm:$0xff]   ;;  %v314_v50 = vlaneseq }
  0x6b   : > { %1209 = vsyncadd (%p1542_p8), [#allocation7], 4294961152  ;;  %494 = vmatprep.subr.bf16.mxu0 %v1005_v0  ;;  %v1010_v3 = vld [vmem:[#allocation6 + $0x10] ss:$8 sps:$4 sm:$0xff]   ;;  %v1011_v4 = vld [vmem:[#allocation6 + $0x24] ss:$8 sps:$4 sm:$0xff]  }
  0x6c   : > { %495 = vmatpush1.bf16.msra.mxu0 %v1007_v1  ;;  %v1013_v5 = vld [vmem:[#allocation6 + $0x20] ss:$8 sps:$4 sm:$0xff]   ;;  %v1014_v6 = vld [vmem:[#allocation6 + $0x34] ss:$8 sps:$4 sm:$0xff]   ;;  %v1016_v7 = vld [vmem:[#allocation6 + $0x30] ss:$8 sps:$4 sm:$0xff]  }
  0x6d   : > { %496 = vmatprep.subr.bf16.mxu0 %v1008_v2  ;;  %v1017_v8 = vld [vmem:[#allocation6 + $0x44] ss:$8 sps:$4 sm:$0xff]   ;;  %v1019_v9 = vld [vmem:[#allocation6 + $0x40] ss:$8 sps:$4 sm:$0xff]   ;;  %v1020_v10 = vld [vmem:[#allocation6 + $0x54] ss:$8 sps:$4 sm:$0xff]  }
  0x6e   : > { %v1022_v11 = vld [vmem:[#allocation6 + $0x50] ss:$8 sps:$4 sm:$0xff]   ;;  %v1023_v12 = vld [vmem:[#allocation6 + $0x64] ss:$8 sps:$4 sm:$0xff]   ;;  %v1025_v13 = vld [vmem:[#allocation6 + $0x60] ss:$8 sps:$4 sm:$0xff]  }
  0x6f   : > { %v1026_v14 = vld [vmem:[#allocation6 + $0x74] ss:$8 sps:$4 sm:$0xff]   ;;  %v1056_v16 = vld [vmem:[#allocation8 + $0x40] sm:$0xff]   ;;  %v1028_v18 = vld [vmem:[#allocation6 + $0x70] ss:$8 sps:$4 sm:$0xff]   ;;  %v315_v51 = vshrl.u32 %v314_v50, 7 }
  0x70   : > { %497 = vmatpush1.bf16.msra.mxu0 %v1010_v3  ;;  %v1055_v15 = vld [vmem:[%s1454_s14 + $0x4] ss:$8 sps:$4 sm:$0xff]   ;;  %910 = vmatprep.subr.bf16.mxu1 %v1056_v16  ;;  %v1031_v23 = vld [vmem:[#allocation6 + $0x80] ss:$8 sps:$4 sm:$0xff]   ;;  %v1034_v27 = vld [vmem:[#allocation6 + $0x90] ss:$8 sps:$4 sm:$0xff]  }
  0x71   : > { %498 = vmatprep.subr.bf16.mxu0 %v1011_v4  ;;  %526 = vmatprep.mubr.bf16.mxu0 %v1055_v15  ;;  %v1057_v17 = vld [vmem:[#allocation8] sm:$0xff]   ;;  %v1058_v19 = vld [vmem:[#allocation8 + $0x48] sm:$0xff]   ;;  %v1060_v21 = vld [vmem:[#allocation8 + $0x50] sm:$0xff]   ;;  %v316_v52 = vsub.s32 0, %v315_v51  ;;  %v320_v54 = vsub.s32 1, %v315_v51  ;;  %s272_s28 = scalar_lea.vmem [#allocation9], %s847_s6 }
  0x72   : > { %911 = vmatpush3.bf16.msra.mxu1 %v1057_v17  ;;  %v1059_v20 = vld [vmem:[#allocation8 + $0x8] sm:$0xff]   ;;  %v1061_v24 = vld [vmem:[#allocation8 + $0x10] sm:$0xff]   ;;  %v1062_v25 = vld [vmem:[#allocation8 + $0x58] sm:$0xff]   ;;  %s745_s13 = sshll.u32 %s272_s28, 4  ;;  %s909_s17 = sshll.u32 %s1291_s22, 8  ;;  %s1475_s13 = int_to_ptr.vmem [resolvable:$true] %s745_s13 }
  0x73   : > { %912 = vmatprep.subr.bf16.mxu1 %v1058_v19  ;;  %v1029_v22 = vld [vmem:[#allocation6 + $0x84] ss:$8 sps:$4 sm:$0xff]   ;;  %v1032_v26 = vld [vmem:[#allocation6 + $0x94] ss:$8 sps:$4 sm:$0xff]   ;;  %v1037_v32 = vld [vmem:[#allocation6 + $0xa0] ss:$8 sps:$4 sm:$0xff]   ;;  %s1480_s12 = scalar_lea.hbm %s1529_s5, %s909_s17 }
  0x74   : > { %499 = vmatpush1.bf16.msra.mxu0 %v1013_v5  ;;  %v1063_v28 = vld [vmem:[#allocation8 + $0x18] sm:$0xff]   ;;  %v1064_v29 = vld [vmem:[#allocation8 + $0x60] sm:$0xff]   ;;  %v1066_v33 = vld [vmem:[#allocation8 + $0x68] sm:$0xff]   ;;  %s732_s30 = scalar_lea.sflag [#allocation5], %s1448_s27  ;;  %s1158_s9 = scalar_lea.vmem %s1475_s13, 256 }
  0x75   : > { %500 = vmatprep.subr.bf16.mxu0 %v1014_v6  ;;  %v1035_v30 = vld [vmem:[#allocation6 + $0xa4] ss:$8 sps:$4 sm:$0xff]   ;;  %v1038_v34 = vld [vmem:[#allocation6 + $0xb4] ss:$8 sps:$4 sm:$0xff]   ;;  %v1040_v35 = vld [vmem:[#allocation6 + $0xb0] ss:$8 sps:$4 sm:$0xff]   ;;  %p1159_p11 = scmp.ne.s32.totalorder %s1475_s13, %s1158_s9 }
  0x76   : > { %913 = vmatpush3.bf16.msra.mxu1 %v1059_v20  ;;  %v1065_v31 = vld [vmem:[#allocation8 + $0x20] sm:$0xff]   ;;  %v1044_v38 = vld [vmem:[#allocation6 + $0xd4] ss:$8 sps:$4 sm:$0xff]   ;;  %v1046_v39 = vld [vmem:[#allocation6 + $0xd0] ss:$8 sps:$4 sm:$0xff]   ;;  %p1543_p0 = scmp.ne.s32.totalorder %s1538_s8, 0 }
  0x77   : > { %914 = vmatprep.subr.bf16.mxu1 %v1060_v21  ;;  %v1041_v36 = vld [vmem:[#allocation6 + $0xc4] ss:$8 sps:$4 sm:$0xff]   ;;  %v1043_v37 = vld [vmem:[#allocation6 + $0xc0] ss:$8 sps:$4 sm:$0xff]   ;;  %v1050_v42 = vld [vmem:[#allocation6 + $0xf4] ss:$8 sps:$4 sm:$0xff]  }
  0x78   : > { %501 = vmatpush1.bf16.msra.mxu0 %v1016_v7  ;;  %v1047_v40 = vld [vmem:[#allocation6 + $0xe4] ss:$8 sps:$4 sm:$0xff]   ;;  %v1049_v41 = vld [vmem:[#allocation6 + $0xe0] ss:$8 sps:$4 sm:$0xff]   ;;  %v1052_v43 = vld [vmem:[#allocation6 + $0xf0] ss:$8 sps:$4 sm:$0xff]   ;;  %p1160_p2 = pnand %p1159_p11, %p1543_p0 }
  0x79   : > { %502 = vmatprep.subr.bf16.mxu0 %v1017_v8  ;;  %v1053_v44 = vld [vmem:[%s1454_s14] ss:$8 sps:$4 sm:$0xff]   ;;  %s1237_s22 = smov [#allocation9]  }
  0x7a   : > { %915 = vmatpush3.bf16.msra.mxu1 %v1061_v24  ;;  %v1067_v45 = vld [vmem:[#allocation8 + $0x28] sm:$0xff]   ;;  %v1068_v46 = vld [vmem:[#allocation8 + $0x70] sm:$0xff]   ;;  %v1070_v48 = vld [vmem:[#allocation8 + $0x78] sm:$0xff]   ;;  %p1161_p3 = pneg %p1160_p2  ;;  %s1162_s6 = sshll.u32 %s1237_s22, 4  ;;  %s1163_s6 = int_to_ptr.vmem [resolvable:$false] %s1162_s6 }
  0x7b   : > { %916 = vmatprep.subr.bf16.mxu1 %v1062_v25  ;;  %v1069_v47 = vld [vmem:[#allocation8 + $0x30] sm:$0xff]   ;;  %v1071_v49 = vld [vmem:[#allocation8 + $0x38] sm:$0xff]   ;;  %v312_v53 = vld [vmem:[%s1526_s2] sm:$0x3]  ;;  %s1164_s10 = scalar_lea.vmem %s1163_s6, 512  ;;  %p1165_p5 = scmp.lt.s32.totalorder %s1475_s13, %s1163_s6 }
  0x7c   : > { %503 = vmatpush1.bf16.msra.mxu0 %v1019_v9  ;;  %v317_v55 = vrot.slane %v312_v53, %v316_v52  ;;  %v321_v56 = vrot.slane %v312_v53, %v320_v54  ;;  %v901_v9 = vld [vmem:[%s1528_s4] ss:$0 sm:$0xff]  ;;  %p1166_p9 = scmp.lt.s32.totalorder %s1164_s10, %s1158_s9 }
  0x7d   : > { %504 = vmatprep.subr.bf16.mxu0 %v1020_v10 }
  0x7e   : > { %917 = vmatpush3.bf16.msra.mxu1 %v1063_v28  ;;  %p1167_p12 = por %p1166_p9, %p1165_p5 }
  0x7f   : > { %918 = vmatprep.subr.bf16.mxu1 %v1064_v29 }
  0x80   : > { %505 = vmatpush1.bf16.msra.mxu0 %v1022_v11  ;;  %p1168_p1 = pnand %p1167_p12, %p1161_p3 }
  0x81   : > { %506 = vmatprep.subr.bf16.mxu0 %v1023_v12 }
  0x82   : > { %919 = vmatpush3.bf16.msra.mxu1 %v1065_v31 }
  0x83   : > { %920 = vmatprep.subr.bf16.mxu1 %v1066_v33 }
  0x84   : > { %507 = vmatpush1.bf16.msra.mxu0 %v1025_v13 }
  0x85   : > { %508 = vmatprep.subr.bf16.mxu0 %v1026_v14 }
  0x86   : > { %921 = vmatpush3.bf16.msra.mxu1 %v1067_v45 }
  0x87   : > { %922 = vmatprep.subr.bf16.mxu1 %v1068_v46 }
  0x88   : > { %509 = vmatpush1.bf16.msra.mxu0 %v1028_v18 }
  0x89   : > { %510 = vmatprep.subr.bf16.mxu0 %v1029_v22 }
  0x8a   : > { %923 = vmatpush3.bf16.msra.mxu1 %v1069_v47 }
  0x8b   : > { %924 = vmatprep.subr.bf16.mxu1 %v1070_v48 }
  0x8c   : > { %511 = vmatpush1.bf16.msra.mxu0 %v1031_v23 }
  0x8d   : > { %512 = vmatprep.subr.bf16.mxu0 %v1032_v26 }
  0x8e   : > { %925 = vmatpush3.bf16.msra.mxu1 %v1071_v49 }
  0x90   : > { %513 = vmatpush1.bf16.msra.mxu0 %v1034_v27 }
  0x91   : > { %514 = vmatprep.subr.bf16.mxu0 %v1035_v30 }
  0x94   : > { %515 = vmatpush1.bf16.msra.mxu0 %v1037_v32 }
  0x95   : > { %516 = vmatprep.subr.bf16.mxu0 %v1038_v34 }
  0x98   : > { %517 = vmatpush1.bf16.msra.mxu0 %v1040_v35 }
  0x99   : > { %518 = vmatprep.subr.bf16.mxu0 %v1041_v36 }
  0x9c   : > { %519 = vmatpush1.bf16.msra.mxu0 %v1043_v37 }
  0x9d   : > { %520 = vmatprep.subr.bf16.mxu0 %v1044_v38 }
  0xa0   : > { %521 = vmatpush1.bf16.msra.mxu0 %v1046_v39 }
  0xa1   : > { %522 = vmatprep.subr.bf16.mxu0 %v1047_v40 }
  0xa4   : > { %523 = vmatpush1.bf16.msra.mxu0 %v1049_v41 }
  0xa5   : > { %524 = vmatprep.subr.bf16.mxu0 %v1050_v42 }
  0xa8   : > { %525 = vmatpush1.bf16.msra.mxu0 %v1052_v43 }
  0xab   : > { %527 = vmatmul.mubr.bf16.vlgmr.msra.gmra.mrb[0].mxu0 %v1053_v44 }
 0x17e   : > { %v528_v57 = vpop.f32.mrb[0].mxu0 }
 0x17f   : > { %v529_v58 = vadd.f32 %v528_v57, %v317_v55  ;;  %v530_v59 = vpop.f32.mrb[1].mxu0 }
 0x180   : > { %v531_v60 = vadd.f32 %v530_v59, %v321_v56  ;;  %v532_v61 = vpop.f32.mrb[2].mxu0 }
 0x181   : > { %v533_v62 = vadd.f32 %v532_v61, %v317_v55  ;;  %v534_v63 = vpop.f32.mrb[3].mxu0  ;;  %v537_v1 = vmax.f32 %v529_v58, 0.0 }
 0x182   : > { %v535_v0 = vadd.f32 %v534_v63, %v321_v56  ;;  %v538_v3 = vmax.f32 %v531_v60, 0.0 }
 0x183   : > { %v539_v2 = vmax.f32 %v533_v62, 0.0 }
 0x184   : > { %v540_v4 = vmax.f32 %v535_v0, 0.0 }
 0x185   : > { %v543_v5 = vpack.c.bf16 %v539_v2, %v537_v1 }
 0x186   : > { %v544_v6 = vpack.c.bf16 %v540_v4, %v538_v3 }
 0x188   : > { %705 = vmatprep.mubr.bf16.mxu1 %v544_v6 }
 0x189   : > { %706 = vmatmul.mubr.bf16.vlgmr.msra.gmra.mrb[0].mxu1 %v543_v5 }
 0x25c   : > { %v926_v7 = vpop.f32.mrb[0].mxu1 }
 0x25d   : > { %v927_v8 = vpop.f32.mrb[1].mxu1 }
 0x25e   : > { %v928_v10 = vadd.f32 %v927_v8, %v926_v7  ;;  %v929_v11 = vpop.f32.mrb[2].mxu1 }
 0x25f   : > { %v930_v12 = vpop.f32.mrb[3].mxu1 }
 0x260   : > { %v727_v13 = vadd.f32 %v928_v10, %v901_v9  ;;  %v931_v14 = vadd.f32 %v930_v12, %v929_v11 }
 0x262   : > { %729 = vst [vmem:[%s272_s28] sm:$0xff] %v727_v13  ;;  %v728_v15 = vadd.f32 %v931_v14, %v901_v9 }
 0x264   : > { %730 = vst [vmem:[%s272_s28 + $0x8] sm:$0xff] %v728_v15 }
 0x265   : > { %1171 = shalt.err (!%p1168_p1)
}
 0x266   : > { %s1172_s14 = scalar_lea.hbm %s1480_s12, 256  ;;  %s1176_s15 = scalar_lea.hbm %s1529_s5, 512 }
 0x267   : > { %p1173_p13 = scmp.ne.s32.totalorder %s1480_s12, %s1172_s14  ;;  %p1177_p4 = scmp.lt.u32.totalorder %s1480_s12, %s1529_s5 }
 0x268   : > { %p1178_p7 = scmp.lt.u32.totalorder %s1176_s15, %s1172_s14  ;;  %p1180_p11 = scmp.lt.u32.totalorder %s1172_s14, %s1480_s12 }
 0x269   : > { %p1174_p6 = pnand %p1173_p13, %p1543_p0 }
 0x26a   : > { %p1179_p8 = por %p1178_p7, %p1177_p4 }
 0x26b   : > { %p1175_p10 = pneg %p1174_p6 }
 0x26c   : > { %p1181_p2 = por %p1180_p11, %p1179_p8 }
 0x26e   : > { %p1182_p3 = pnand %p1181_p2, %p1175_p10 }
 0x270   : > { %1185 = shalt.err (!%p1182_p3)
}
 0x271   : > { %s1238_s17 = smov 128   ;;  %s1239_s11 = smov 8  }
 0x272   : > { %942 = dma.vmem_to_hbm [thread:$0]  (%p1543_p0), %s1475_s13, 256, %s1480_s12, %s732_s30, %s1238_s17, %s1238_s17, %s1239_s11  }
 0x273 PF: > { %s760_s29 = sand.u32 1, %s1216_s18   ;;  %p1544_p5 = scmp.ne.s32.totalorder %s1534_s25, 0 }
 0x274   : > { %p1545_p9 = scmp.ge.s32.totalorder %s1228_s21, 2  ;;  %s761_s9 = scalar_lea.sflag [#allocation5], %s760_s29 }
 0x276   : > { %p956_p12 = pnand %p1545_p9, %p1544_p5 }
 0x278   : > { %1211 = dma.done.wait (!%p956_p12), %s761_s9, 256  }
 0x279   : > { %1213 = vsyncadd (!%p956_p12), %s761_s9, 4294967040  ;;  %p19_p1 = scmp.ge.s32.totalorder %s1383_s23, 4   ;;  %s1546_s18 = smov %s1220_s19 }
 0x27a   : > { %s1547_s19 = smov %s1224_s20  ;;  %s1548_s20 = smov %s1392_s7 }
 0x27b   : > { %s1549_s21 = smov %s1383_s23  ;;  %21 = sbr.rel (!%p19_p1) target bundleno = 6 (0x6), region = 93 }
 0x282   :  { %766 = vsyncpa [#allocation4], 1 }
 0x283   :  { %768 = vsyncpa [#allocation4 + $0x1], 1 }
 0x284   :  { %769 = vsyncpa [#allocation7], 1 }
 0x285   :  { %770 = vsyncpa [#allocation5], 1 }
 0x286   :  { %772 = vsyncpa [#allocation5 + $0x1], 1 }

</bundles_post_ra>
